<compile_context>
chip_gen: v5e
topology: v5e:2x2
jax: 0.10.0
libtpu: 0.0.40
codegen_flags: <defaults>
</compile_context>

<pallas_src>
import jax
import jax.numpy as jnp
from jax.experimental import pallas as pl
from jax.experimental.pallas import tpu as pltpu

# ----------------------------------------------------------------------------
# Lanczos lgamma (g=7, 9 coefficients) in rational-polynomial form.
# The partial-fraction series  c0 + sum_i c_i/(u+i)  (u = z-1) is expanded at
# import time into a single ratio P(u)/Q(u) so the kernel evaluates two Horner
# polynomials on the VPU and issues exactly one (approx) reciprocal per lgamma.
# Valid for z > 0 (every lgamma argument in this model is > 0).
# NOTE: P,Q ~ u^8 in f32 -> fine for realistic purchase counts (x up to a few
# hundred); would lose precision / overflow only for z ~ 1e4+.
# ----------------------------------------------------------------------------
_LANCZOS_G = 7.0
_LANCZOS_COEF = (
    0.99999999999980993,
    676.5203681218851,
    -1259.1392167224028,
    771.32342877765313,
    -176.61502916214059,
    12.507343278686905,
    -0.13857109526572012,
    9.9843695780195716e-6,
    1.5056327351493116e-7,
)
_HALF_LOG_2PI = 0.9189385332046727   # 0.5 * log(2*pi)
_LOG_1P5 = 0.4054651081081644        # log(1.5)
# Taylor coefficients of log(1+w) (no constant term), highest degree first.
_SOFTPLUS_TAYLOR = (1.0 / 9.0, -1.0 / 8.0, 1.0 / 7.0, -1.0 / 6.0,
                    1.0 / 5.0, -1.0 / 4.0, 1.0 / 3.0, -1.0 / 2.0, 1.0)


def _poly_mul(p, q):
    out = [0.0] * (len(p) + len(q) - 1)
    for i, a in enumerate(p):
        for j, b in enumerate(q):
            out[i + j] += a * b
    return out


def _poly_axpy(acc, coef, p):
    off = len(acc) - len(p)
    for i, c in enumerate(p):
        acc[off + i] += coef * c
    return acc


def _build_rational_lanczos():
    # Q(u) = prod_{i=1..8} (u + i)
    q = [1.0]
    for i in range(1, 9):
        q = _poly_mul(q, [1.0, float(i)])
    # P(u) = c0 * Q(u) + sum_j c_j * prod_{i != j} (u + i)
    p = [_LANCZOS_COEF[0] * c for c in q]
    for j in range(1, 9):
        pj = [1.0]
        for i in range(1, 9):
            if i != j:
                pj = _poly_mul(pj, [1.0, float(i)])
        p = _poly_axpy(p, _LANCZOS_COEF[j], pj)
    return tuple(p), tuple(q)


_P_COEFS, _Q_COEFS = _build_rational_lanczos()


# ----------------------------------------------------------------------------
# Pallas kernel: elementwise MBG/NBD individual log-likelihood.
# EUP budget per element: 3 approx reciprocals + 7 logs + 1 exp.
# ----------------------------------------------------------------------------
def _mbg_nbd_kernel(p_ref, x_ref, tx_ref, T_ref, out_ref):
    # Scalar parameters / folded constants from SMEM.
    r = p_ref[0]
    alpha = p_ref[1]
    b = p_ref[2]
    a_plus_b = p_ref[3]
    C1 = p_ref[4]   # r*log(alpha) - lg(r) + lg(a)   - logB0 + 0.5*log(2*pi)
    C2 = p_ref[5]   # r*log(alpha) - lg(r) + lg(a+1) - logB0 + 0.5*log(2*pi)

    x = x_ref[...]
    t_x = tx_ref[...]
    T = T_ref[...]

    rx = r + x
    bx = b + x
    abx = a_plus_b + x

    u_rx = rx - 1.0          # lgamma(r + x)
    u_bx = bx - 1.0          # lgamma(b + x)
    u_ab = abx               # lgamma(a + b + x + 1)

    def horner(coefs, u):
        acc = coefs[0]
        for c in coefs[1:]:
            acc = acc * u + c
        return acc

    def recip(v):
        # Approx EUP reciprocal + one Newton step on the VPU (~2^-24 rel err).
        r0 = pl.reciprocal(v, approx=True)
        return r0 * (2.0 - v * r0)

    p_rx, q_rx = horner(_P_COEFS, u_rx), horner(_Q_COEFS, u_rx)
    p_bx, q_bx = horner(_P_COEFS, u_bx), horner(_Q_COEFS, u_bx)
    p_ab, q_ab = horner(_P_COEFS, u_ab), horner(_Q_COEFS, u_ab)

    s_rx = p_rx * recip(q_rx)
    s_bx = p_bx * recip(q_bx)
    inv_s_ab = q_ab * recip(p_ab)

    # Merge the three Lanczos-ratio logs into a single log (O(1)-ish product).
    ratio_log = jnp.log(s_rx * s_bx * inv_s_ab)

    gh = _LANCZOS_G + 0.5
    t_rx = u_rx + gh
    t_bx = u_bx + gh
    t_ab = u_ab + gh

    stirling = ((u_rx + 0.5) * jnp.log(t_rx) - t_rx
                + (u_bx + 0.5) * jnp.log(t_bx) - t_bx
                - ((u_ab + 0.5) * jnp.log(t_ab) - t_ab))

    # svec + 0.5*log(2*pi) = lgamma(r+x) + lgamma(b+x) - lgamma(a+b+x+1)
    # (the 0.5*log(2*pi) is folded into C1 / C2 in the wrapper).
    svec = stirling + ratio_log

    # lgamma(b+x+1) = lgamma(b+x) + log(b+x)  (recurrence, term1 only).
    log_term1 = C1 + svec + jnp.log(bx) - rx * jnp.log(alpha + T)
    log_term2 = C2 + svec - rx * jnp.log(alpha + t_x)

    # logsumexp: m + log1p(exp(-d)), with log1p done on the VPU.
    m = jnp.maximum(log_term1, log_term2)
    d = jnp.abs(log_term1 - log_term2)
    u = jnp.exp(-d)                   # in (0, 1]
    w = (u - 0.5) * (2.0 / 3.0)       # in [-1/3, 1/3]
    sp = 0.0
    for c in _SOFTPLUS_TAYLOR:
        sp = sp * w + c
    sp = sp * w                       # ~= log(1 + w), abs err < 3e-6
    out_ref[...] = m + (_LOG_1P5 + sp)


# ----------------------------------------------------------------------------
# Wrapper: parameter folding, tiling / padding, pallas_call.
# ----------------------------------------------------------------------------
_LANES = 128
_SUBLANES = 8
_MAX_BLOCK_ROWS = 1024   # (1024,128) f32 = 512 KiB per buffer; 3 in + 1 out,
                         # double-buffered + elementwise temps stays well under
                         # the 32 MiB scoped-VMEM default on v5e/v6e/v7x.


def _round_up(v, m):
    return (v + m - 1) // m * m


@jax.jit
def mbg_nbd_forward(log_params, x, t_x, T):
    """log_params: f32[4] = [log_r, log_alpha, log_a, log_b]; x/t_x/T: f32[N]."""
    r = jnp.exp(log_params[0])
    alpha = jnp.exp(log_params[1])
    a = jnp.exp(log_params[2])
    b = jnp.exp(log_params[3])

    # Scalar-only parameter setup (plain JAX, outside the kernel).
    lg = jax.lax.lgamma
    logB0 = lg(a) + lg(b) - lg(a + b)
    const_common = r * jnp.log(alpha) - lg(r)
    C1 = const_common + lg(a) - logB0 + _HALF_LOG_2PI
    C2 = const_common + lg(a + 1.0) - logB0 + _HALF_LOG_2PI

    params = jnp.stack(
        [r, alpha, b, a + b, C1, C2, jnp.float32(0.0), jnp.float32(0.0)]
    ).astype(jnp.float32)

    # --- Tiling: minimal padding, >= 2 (even) grid programs when possible. ---
    n = x.shape[0]
    nrows = max(pl.cdiv(n, _LANES), 1)
    num_blocks = pl.cdiv(nrows, _MAX_BLOCK_ROWS)
    if nrows >= 2 * _SUBLANES:
        num_blocks = max(num_blocks, 2)       # keep both v7x TensorCores busy
    if num_blocks > 1:
        num_blocks = _round_up(num_blocks, 2)
    block_rows = _round_up(pl.cdiv(nrows, num_blocks), _SUBLANES)
    total_rows = block_rows * num_blocks
    npad = total_rows * _LANES - n

    def _prep(v):
        v = v.astype(jnp.float32)
        if npad:
            v = jnp.pad(v, (0, npad))         # zero pad is safe for all terms
        return v.reshape(total_rows, _LANES)

    x2 = _prep(x)
    tx2 = _prep(t_x)
    T2 = _prep(T)

    data_spec = pl.BlockSpec((block_rows, _LANES), lambda i: (i, 0))

    out = pl.pallas_call(
        _mbg_nbd_kernel,
        out_shape=jax.ShapeDtypeStruct((total_rows, _LANES), jnp.float32),
        grid=(num_blocks,),
        in_specs=[
            pl.BlockSpec(memory_space=pltpu.MemorySpace.SMEM),   # params
            data_spec,                                           # x
            data_spec,                                           # t_x
            data_spec,                                           # T
        ],
        out_specs=pl.BlockSpec((block_rows, _LANES), lambda i: (i, 0)),
        compiler_params=pltpu.CompilerParams(
            dimension_semantics=("parallel",)),
        cost_estimate=pl.CostEstimate(
            flops=120 * total_rows * _LANES,
            transcendentals=11 * total_rows * _LANES,
            bytes_accessed=16 * total_rows * _LANES),
    )(params, x2, tx2, T2)

    return out.reshape(-1)[:n]


# ----------------------------------------------------------------------------
# Pure-JAX reference (mirrors the PyTorch forward) for a correctness check.
# ----------------------------------------------------------------------------
def _reference_forward(log_params, x, t_x, T):
    lg = jax.lax.lgamma
    x = x.astype(jnp.float32)
    t_x = t_x.astype(jnp.float32)
    T = T.astype(jnp.float32)
    r = jnp.exp(log_params[0])
    alpha = jnp.exp(log_params[1])
    a = jnp.exp(log_params[2])
    b = jnp.exp(log_params[3])
    log_gamma_ratio = lg(r + x) - lg(r)
    common = log_gamma_ratio + r * jnp.log(alpha)
    logB1 = lg(a) + lg(b + x + 1.0) - lg(a + b + x + 1.0)
    logB0 = lg(a) + lg(b) - lg(a + b)
    beta_ratio1 = logB1 - logB0
    logB2 = lg(a + 1.0) + lg(b + x) - lg(a + b + x + 1.0)
    beta_ratio2 = logB2 - logB0
    log_term1 = common - (r + x) * jnp.log(alpha + T) + beta_ratio1
    log_term2 = common - (r + x) * jnp.log(alpha + t_x) + beta_ratio2
    stacked = jnp.stack([log_term1, log_term2], axis=0)
    return jax.scipy.special.logsumexp(stacked, axis=0)


# TODO(synk): active_probability / expected_transactions (torch.special.hyp2f1)
# are not part of forward() and are not implemented as kernels.

if __name__ == "__main__":
    # Deterministic parameter init (same defaults as the PyTorch module).
    init = {"r": 1.0, "alpha": 1.0, "a": 1.1, "b": 1.0}
    log_params = jnp.log(
        jnp.array([init["r"], init["alpha"], init["a"], init["b"]],
                  dtype=jnp.float32))

    # Deterministic synthetic customer data.
    key = jax.random.PRNGKey(0)
    k1, k2, k3 = jax.random.split(key, 3)
    n_customers = 2000
    x = jax.random.randint(k1, (n_customers,), 0, 11).astype(jnp.float32)
    T = jax.random.uniform(k2, (n_customers,), jnp.float32, 10.0, 52.0)
    t_x = jax.random.uniform(k3, (n_customers,), jnp.float32, 0.0, 1.0) * T
    t_x = jnp.where(x == 0, 0.0, t_x)   # convention: t_x = 0 when x == 0

    ll = mbg_nbd_forward(log_params, x, t_x, T)
    ll = jax.block_until_ready(ll)

    ref = _reference_forward(log_params, x, t_x, T)
    assert ll.shape == (n_customers,) and ll.dtype == jnp.float32
    assert jnp.allclose(ll, ref, rtol=1e-3, atol=1e-3), (
        f"max abs diff {jnp.max(jnp.abs(ll - ref))}")

    print("KERNEL_OK")
</pallas_src>

<mosaic_0001>
module attributes {stable_mosaic.version = 11 : i64} {
  func.func @_mbg_nbd_kernel(%arg0: i32, %arg1: memref<8xf32, #tpu.memory_space<smem>>, %arg2: memref<8x128xf32, #tpu.memory_space<vmem>>, %arg3: memref<8x128xf32, #tpu.memory_space<vmem>>, %arg4: memref<8x128xf32, #tpu.memory_space<vmem>>, %arg5: memref<8x128xf32, #tpu.memory_space<vmem>>) attributes {dimension_semantics = [#tpu.dimension_semantics<parallel>], iteration_bounds = array<i64: 2>, scalar_prefetch = 0 : i64, scratch_operands = 0 : i64, tpu.core_type = #tpu.core_type<tc>, window_params = [{transform_indices = @transform_0, window_bounds = array<i64: 8>}, {transform_indices = @transform_1, window_bounds = array<i64: 8, 128>}, {transform_indices = @transform_2, window_bounds = array<i64: 8, 128>}, {transform_indices = @transform_3, window_bounds = array<i64: 8, 128>}, {transform_indices = @transform_4, window_bounds = array<i64: 8, 128>}]} {
    %c0 = arith.constant 0 : index
    %0 = memref.load %arg1[%c0] : memref<8xf32, #tpu.memory_space<smem>>
    %c1 = arith.constant 1 : index
    %1 = memref.load %arg1[%c1] : memref<8xf32, #tpu.memory_space<smem>>
    %c2 = arith.constant 2 : index
    %2 = memref.load %arg1[%c2] : memref<8xf32, #tpu.memory_space<smem>>
    %c3 = arith.constant 3 : index
    %3 = memref.load %arg1[%c3] : memref<8xf32, #tpu.memory_space<smem>>
    %c4 = arith.constant 4 : index
    %4 = memref.load %arg1[%c4] : memref<8xf32, #tpu.memory_space<smem>>
    %c5 = arith.constant 5 : index
    %5 = memref.load %arg1[%c5] : memref<8xf32, #tpu.memory_space<smem>>
    %c0_0 = arith.constant 0 : index
    %c0_1 = arith.constant 0 : index
    %6 = vector.load %arg2[%c0_0, %c0_1] : memref<8x128xf32, #tpu.memory_space<vmem>>, vector<8x128xf32>
    %c0_2 = arith.constant 0 : index
    %c0_3 = arith.constant 0 : index
    %7 = vector.load %arg3[%c0_2, %c0_3] : memref<8x128xf32, #tpu.memory_space<vmem>>, vector<8x128xf32>
    %c0_4 = arith.constant 0 : index
    %c0_5 = arith.constant 0 : index
    %8 = vector.load %arg4[%c0_4, %c0_5] : memref<8x128xf32, #tpu.memory_space<vmem>>, vector<8x128xf32>
    %9 = vector.broadcast %0 : f32 to vector<8x128xf32>
    %10 = arith.addf %9, %6 : vector<8x128xf32>
    %11 = vector.broadcast %2 : f32 to vector<8x128xf32>
    %12 = arith.addf %11, %6 : vector<8x128xf32>
    %13 = vector.broadcast %3 : f32 to vector<8x128xf32>
    %14 = arith.addf %13, %6 : vector<8x128xf32>
    %cst = arith.constant 1.000000e+00 : f32
    %15 = vector.broadcast %cst : f32 to vector<8x128xf32>
    %16 = arith.subf %10, %15 : vector<8x128xf32>
    %cst_6 = arith.constant 1.000000e+00 : f32
    %17 = vector.broadcast %cst_6 : f32 to vector<8x128xf32>
    %18 = arith.subf %12, %17 : vector<8x128xf32>
    %cst_7 = arith.constant 1.000000e+00 : f32
    %19 = vector.broadcast %cst_7 : f32 to vector<8x128xf32>
    %20 = arith.mulf %19, %16 : vector<8x128xf32>
    %cst_8 = arith.constant 60.4583321 : f32
    %21 = vector.broadcast %cst_8 : f32 to vector<8x128xf32>
    %22 = arith.addf %20, %21 : vector<8x128xf32>
    %23 = arith.mulf %22, %16 : vector<8x128xf32>
    %cst_9 = arith.constant 1599.04248 : f32
    %24 = vector.broadcast %cst_9 : f32 to vector<8x128xf32>
    %25 = arith.addf %23, %24 : vector<8x128xf32>
    %26 = arith.mulf %25, %16 : vector<8x128xf32>
    %cst_10 = arith.constant 24165.5098 : f32
    %27 = vector.broadcast %cst_10 : f32 to vector<8x128xf32>
    %28 = arith.addf %26, %27 : vector<8x128xf32>
    %29 = arith.mulf %28, %16 : vector<8x128xf32>
    %cst_11 = arith.constant 228235.219 : f32
    %30 = vector.broadcast %cst_11 : f32 to vector<8x128xf32>
    %31 = arith.addf %29, %30 : vector<8x128xf32>
    %32 = arith.mulf %31, %16 : vector<8x128xf32>
    %cst_12 = arith.constant 1379496.25 : f32
    %33 = vector.broadcast %cst_12 : f32 to vector<8x128xf32>
    %34 = arith.addf %32, %33 : vector<8x128xf32>
    %35 = arith.mulf %34, %16 : vector<8x128xf32>
    %cst_13 = arith.constant 0x4A9F05EA : f32
    %36 = vector.broadcast %cst_13 : f32 to vector<8x128xf32>
    %37 = arith.addf %35, %36 : vector<8x128xf32>
    %38 = arith.mulf %37, %16 : vector<8x128xf32>
    %cst_14 = arith.constant 0x4B2B9D51 : f32
    %39 = vector.broadcast %cst_14 : f32 to vector<8x128xf32>
    %40 = arith.addf %38, %39 : vector<8x128xf32>
    %41 = arith.mulf %40, %16 : vector<8x128xf32>
    %cst_15 = arith.constant 0x4B220ADA : f32
    %42 = vector.broadcast %cst_15 : f32 to vector<8x128xf32>
    %43 = arith.addf %41, %42 : vector<8x128xf32>
    %cst_16 = arith.constant 1.000000e+00 : f32
    %44 = vector.broadcast %cst_16 : f32 to vector<8x128xf32>
    %45 = arith.mulf %44, %16 : vector<8x128xf32>
    %cst_17 = arith.constant 3.600000e+01 : f32
    %46 = vector.broadcast %cst_17 : f32 to vector<8x128xf32>
    %47 = arith.addf %45, %46 : vector<8x128xf32>
    %48 = arith.mulf %47, %16 : vector<8x128xf32>
    %cst_18 = arith.constant 5.460000e+02 : f32
    %49 = vector.broadcast %cst_18 : f32 to vector<8x128xf32>
    %50 = arith.addf %48, %49 : vector<8x128xf32>
    %51 = arith.mulf %50, %16 : vector<8x128xf32>
    %cst_19 = arith.constant 4.536000e+03 : f32
    %52 = vector.broadcast %cst_19 : f32 to vector<8x128xf32>
    %53 = arith.addf %51, %52 : vector<8x128xf32>
    %54 = arith.mulf %53, %16 : vector<8x128xf32>
    %cst_20 = arith.constant 2.244900e+04 : f32
    %55 = vector.broadcast %cst_20 : f32 to vector<8x128xf32>
    %56 = arith.addf %54, %55 : vector<8x128xf32>
    %57 = arith.mulf %56, %16 : vector<8x128xf32>
    %cst_21 = arith.constant 6.728400e+04 : f32
    %58 = vector.broadcast %cst_21 : f32 to vector<8x128xf32>
    %59 = arith.addf %57, %58 : vector<8x128xf32>
    %60 = arith.mulf %59, %16 : vector<8x128xf32>
    %cst_22 = arith.constant 1.181240e+05 : f32
    %61 = vector.broadcast %cst_22 : f32 to vector<8x128xf32>
    %62 = arith.addf %60, %61 : vector<8x128xf32>
    %63 = arith.mulf %62, %16 : vector<8x128xf32>
    %cst_23 = arith.constant 1.095840e+05 : f32
    %64 = vector.broadcast %cst_23 : f32 to vector<8x128xf32>
    %65 = arith.addf %63, %64 : vector<8x128xf32>
    %66 = arith.mulf %65, %16 : vector<8x128xf32>
    %cst_24 = arith.constant 4.032000e+04 : f32
    %67 = vector.broadcast %cst_24 : f32 to vector<8x128xf32>
    %68 = arith.addf %66, %67 : vector<8x128xf32>
    %cst_25 = arith.constant 1.000000e+00 : f32
    %69 = vector.broadcast %cst_25 : f32 to vector<8x128xf32>
    %70 = arith.mulf %69, %18 : vector<8x128xf32>
    %cst_26 = arith.constant 60.4583321 : f32
    %71 = vector.broadcast %cst_26 : f32 to vector<8x128xf32>
    %72 = arith.addf %70, %71 : vector<8x128xf32>
    %73 = arith.mulf %72, %18 : vector<8x128xf32>
    %cst_27 = arith.constant 1599.04248 : f32
    %74 = vector.broadcast %cst_27 : f32 to vector<8x128xf32>
    %75 = arith.addf %73, %74 : vector<8x128xf32>
    %76 = arith.mulf %75, %18 : vector<8x128xf32>
    %cst_28 = arith.constant 24165.5098 : f32
    %77 = vector.broadcast %cst_28 : f32 to vector<8x128xf32>
    %78 = arith.addf %76, %77 : vector<8x128xf32>
    %79 = arith.mulf %78, %18 : vector<8x128xf32>
    %cst_29 = arith.constant 228235.219 : f32
    %80 = vector.broadcast %cst_29 : f32 to vector<8x128xf32>
    %81 = arith.addf %79, %80 : vector<8x128xf32>
    %82 = arith.mulf %81, %18 : vector<8x128xf32>
    %cst_30 = arith.constant 1379496.25 : f32
    %83 = vector.broadcast %cst_30 : f32 to vector<8x128xf32>
    %84 = arith.addf %82, %83 : vector<8x128xf32>
    %85 = arith.mulf %84, %18 : vector<8x128xf32>
    %cst_31 = arith.constant 0x4A9F05EA : f32
    %86 = vector.broadcast %cst_31 : f32 to vector<8x128xf32>
    %87 = arith.addf %85, %86 : vector<8x128xf32>
    %88 = arith.mulf %87, %18 : vector<8x128xf32>
    %cst_32 = arith.constant 0x4B2B9D51 : f32
    %89 = vector.broadcast %cst_32 : f32 to vector<8x128xf32>
    %90 = arith.addf %88, %89 : vector<8x128xf32>
    %91 = arith.mulf %90, %18 : vector<8x128xf32>
    %cst_33 = arith.constant 0x4B220ADA : f32
    %92 = vector.broadcast %cst_33 : f32 to vector<8x128xf32>
    %93 = arith.addf %91, %92 : vector<8x128xf32>
    %cst_34 = arith.constant 1.000000e+00 : f32
    %94 = vector.broadcast %cst_34 : f32 to vector<8x128xf32>
    %95 = arith.mulf %94, %18 : vector<8x128xf32>
    %cst_35 = arith.constant 3.600000e+01 : f32
    %96 = vector.broadcast %cst_35 : f32 to vector<8x128xf32>
    %97 = arith.addf %95, %96 : vector<8x128xf32>
    %98 = arith.mulf %97, %18 : vector<8x128xf32>
    %cst_36 = arith.constant 5.460000e+02 : f32
    %99 = vector.broadcast %cst_36 : f32 to vector<8x128xf32>
    %100 = arith.addf %98, %99 : vector<8x128xf32>
    %101 = arith.mulf %100, %18 : vector<8x128xf32>
    %cst_37 = arith.constant 4.536000e+03 : f32
    %102 = vector.broadcast %cst_37 : f32 to vector<8x128xf32>
    %103 = arith.addf %101, %102 : vector<8x128xf32>
    %104 = arith.mulf %103, %18 : vector<8x128xf32>
    %cst_38 = arith.constant 2.244900e+04 : f32
    %105 = vector.broadcast %cst_38 : f32 to vector<8x128xf32>
    %106 = arith.addf %104, %105 : vector<8x128xf32>
    %107 = arith.mulf %106, %18 : vector<8x128xf32>
    %cst_39 = arith.constant 6.728400e+04 : f32
    %108 = vector.broadcast %cst_39 : f32 to vector<8x128xf32>
    %109 = arith.addf %107, %108 : vector<8x128xf32>
    %110 = arith.mulf %109, %18 : vector<8x128xf32>
    %cst_40 = arith.constant 1.181240e+05 : f32
    %111 = vector.broadcast %cst_40 : f32 to vector<8x128xf32>
    %112 = arith.addf %110, %111 : vector<8x128xf32>
    %113 = arith.mulf %112, %18 : vector<8x128xf32>
    %cst_41 = arith.constant 1.095840e+05 : f32
    %114 = vector.broadcast %cst_41 : f32 to vector<8x128xf32>
    %115 = arith.addf %113, %114 : vector<8x128xf32>
    %116 = arith.mulf %115, %18 : vector<8x128xf32>
    %cst_42 = arith.constant 4.032000e+04 : f32
    %117 = vector.broadcast %cst_42 : f32 to vector<8x128xf32>
    %118 = arith.addf %116, %117 : vector<8x128xf32>
    %cst_43 = arith.constant 1.000000e+00 : f32
    %119 = vector.broadcast %cst_43 : f32 to vector<8x128xf32>
    %120 = arith.mulf %119, %14 : vector<8x128xf32>
    %cst_44 = arith.constant 60.4583321 : f32
    %121 = vector.broadcast %cst_44 : f32 to vector<8x128xf32>
    %122 = arith.addf %120, %121 : vector<8x128xf32>
    %123 = arith.mulf %122, %14 : vector<8x128xf32>
    %cst_45 = arith.constant 1599.04248 : f32
    %124 = vector.broadcast %cst_45 : f32 to vector<8x128xf32>
    %125 = arith.addf %123, %124 : vector<8x128xf32>
    %126 = arith.mulf %125, %14 : vector<8x128xf32>
    %cst_46 = arith.constant 24165.5098 : f32
    %127 = vector.broadcast %cst_46 : f32 to vector<8x128xf32>
    %128 = arith.addf %126, %127 : vector<8x128xf32>
    %129 = arith.mulf %128, %14 : vector<8x128xf32>
    %cst_47 = arith.constant 228235.219 : f32
    %130 = vector.broadcast %cst_47 : f32 to vector<8x128xf32>
    %131 = arith.addf %129, %130 : vector<8x128xf32>
    %132 = arith.mulf %131, %14 : vector<8x128xf32>
    %cst_48 = arith.constant 1379496.25 : f32
    %133 = vector.broadcast %cst_48 : f32 to vector<8x128xf32>
    %134 = arith.addf %132, %133 : vector<8x128xf32>
    %135 = arith.mulf %134, %14 : vector<8x128xf32>
    %cst_49 = arith.constant 0x4A9F05EA : f32
    %136 = vector.broadcast %cst_49 : f32 to vector<8x128xf32>
    %137 = arith.addf %135, %136 : vector<8x128xf32>
    %138 = arith.mulf %137, %14 : vector<8x128xf32>
    %cst_50 = arith.constant 0x4B2B9D51 : f32
    %139 = vector.broadcast %cst_50 : f32 to vector<8x128xf32>
    %140 = arith.addf %138, %139 : vector<8x128xf32>
    %141 = arith.mulf %140, %14 : vector<8x128xf32>
    %cst_51 = arith.constant 0x4B220ADA : f32
    %142 = vector.broadcast %cst_51 : f32 to vector<8x128xf32>
    %143 = arith.addf %141, %142 : vector<8x128xf32>
    %cst_52 = arith.constant 1.000000e+00 : f32
    %144 = vector.broadcast %cst_52 : f32 to vector<8x128xf32>
    %145 = arith.mulf %144, %14 : vector<8x128xf32>
    %cst_53 = arith.constant 3.600000e+01 : f32
    %146 = vector.broadcast %cst_53 : f32 to vector<8x128xf32>
    %147 = arith.addf %145, %146 : vector<8x128xf32>
    %148 = arith.mulf %147, %14 : vector<8x128xf32>
    %cst_54 = arith.constant 5.460000e+02 : f32
    %149 = vector.broadcast %cst_54 : f32 to vector<8x128xf32>
    %150 = arith.addf %148, %149 : vector<8x128xf32>
    %151 = arith.mulf %150, %14 : vector<8x128xf32>
    %cst_55 = arith.constant 4.536000e+03 : f32
    %152 = vector.broadcast %cst_55 : f32 to vector<8x128xf32>
    %153 = arith.addf %151, %152 : vector<8x128xf32>
    %154 = arith.mulf %153, %14 : vector<8x128xf32>
    %cst_56 = arith.constant 2.244900e+04 : f32
    %155 = vector.broadcast %cst_56 : f32 to vector<8x128xf32>
    %156 = arith.addf %154, %155 : vector<8x128xf32>
    %157 = arith.mulf %156, %14 : vector<8x128xf32>
    %cst_57 = arith.constant 6.728400e+04 : f32
    %158 = vector.broadcast %cst_57 : f32 to vector<8x128xf32>
    %159 = arith.addf %157, %158 : vector<8x128xf32>
    %160 = arith.mulf %159, %14 : vector<8x128xf32>
    %cst_58 = arith.constant 1.181240e+05 : f32
    %161 = vector.broadcast %cst_58 : f32 to vector<8x128xf32>
    %162 = arith.addf %160, %161 : vector<8x128xf32>
    %163 = arith.mulf %162, %14 : vector<8x128xf32>
    %cst_59 = arith.constant 1.095840e+05 : f32
    %164 = vector.broadcast %cst_59 : f32 to vector<8x128xf32>
    %165 = arith.addf %163, %164 : vector<8x128xf32>
    %166 = arith.mulf %165, %14 : vector<8x128xf32>
    %cst_60 = arith.constant 4.032000e+04 : f32
    %167 = vector.broadcast %cst_60 : f32 to vector<8x128xf32>
    %168 = arith.addf %166, %167 : vector<8x128xf32>
    %169 = tpu.reciprocal %68 {approx = true} : vector<8x128xf32> -> vector<8x128xf32>
    %170 = arith.mulf %68, %169 : vector<8x128xf32>
    %cst_61 = arith.constant 2.000000e+00 : f32
    %171 = vector.broadcast %cst_61 : f32 to vector<8x128xf32>
    %172 = arith.subf %171, %170 : vector<8x128xf32>
    %173 = arith.mulf %169, %172 : vector<8x128xf32>
    %174 = arith.mulf %43, %173 : vector<8x128xf32>
    %175 = tpu.reciprocal %118 {approx = true} : vector<8x128xf32> -> vector<8x128xf32>
    %176 = arith.mulf %118, %175 : vector<8x128xf32>
    %cst_62 = arith.constant 2.000000e+00 : f32
    %177 = vector.broadcast %cst_62 : f32 to vector<8x128xf32>
    %178 = arith.subf %177, %176 : vector<8x128xf32>
    %179 = arith.mulf %175, %178 : vector<8x128xf32>
    %180 = arith.mulf %93, %179 : vector<8x128xf32>
    %181 = tpu.reciprocal %143 {approx = true} : vector<8x128xf32> -> vector<8x128xf32>
    %182 = arith.mulf %143, %181 : vector<8x128xf32>
    %cst_63 = arith.constant 2.000000e+00 : f32
    %183 = vector.broadcast %cst_63 : f32 to vector<8x128xf32>
    %184 = arith.subf %183, %182 : vector<8x128xf32>
    %185 = arith.mulf %181, %184 : vector<8x128xf32>
    %186 = arith.mulf %168, %185 : vector<8x128xf32>
    %187 = arith.mulf %174, %180 : vector<8x128xf32>
    %188 = arith.mulf %187, %186 : vector<8x128xf32>
    %189 = math.log %188 : vector<8x128xf32>
    %cst_64 = arith.constant 7.500000e+00 : f32
    %190 = vector.broadcast %cst_64 : f32 to vector<8x128xf32>
    %191 = arith.addf %16, %190 : vector<8x128xf32>
    %cst_65 = arith.constant 7.500000e+00 : f32
    %192 = vector.broadcast %cst_65 : f32 to vector<8x128xf32>
    %193 = arith.addf %18, %192 : vector<8x128xf32>
    %cst_66 = arith.constant 7.500000e+00 : f32
    %194 = vector.broadcast %cst_66 : f32 to vector<8x128xf32>
    %195 = arith.addf %14, %194 : vector<8x128xf32>
    %cst_67 = arith.constant 5.000000e-01 : f32
    %196 = vector.broadcast %cst_67 : f32 to vector<8x128xf32>
    %197 = arith.addf %16, %196 : vector<8x128xf32>
    %198 = math.log %191 : vector<8x128xf32>
    %199 = arith.mulf %197, %198 : vector<8x128xf32>
    %200 = arith.subf %199, %191 : vector<8x128xf32>
    %cst_68 = arith.constant 5.000000e-01 : f32
    %201 = vector.broadcast %cst_68 : f32 to vector<8x128xf32>
    %202 = arith.addf %18, %201 : vector<8x128xf32>
    %203 = math.log %193 : vector<8x128xf32>
    %204 = arith.mulf %202, %203 : vector<8x128xf32>
    %205 = arith.addf %200, %204 : vector<8x128xf32>
    %206 = arith.subf %205, %193 : vector<8x128xf32>
    %cst_69 = arith.constant 5.000000e-01 : f32
    %207 = vector.broadcast %cst_69 : f32 to vector<8x128xf32>
    %208 = arith.addf %14, %207 : vector<8x128xf32>
    %209 = math.log %195 : vector<8x128xf32>
    %210 = arith.mulf %208, %209 : vector<8x128xf32>
    %211 = arith.subf %210, %195 : vector<8x128xf32>
    %212 = arith.subf %206, %211 : vector<8x128xf32>
    %213 = arith.addf %212, %189 : vector<8x128xf32>
    %214 = vector.broadcast %4 : f32 to vector<8x128xf32>
    %215 = arith.addf %214, %213 : vector<8x128xf32>
    %216 = math.log %12 : vector<8x128xf32>
    %217 = arith.addf %215, %216 : vector<8x128xf32>
    %218 = vector.broadcast %1 : f32 to vector<8x128xf32>
    %219 = arith.addf %218, %8 : vector<8x128xf32>
    %220 = math.log %219 : vector<8x128xf32>
    %221 = arith.mulf %10, %220 : vector<8x128xf32>
    %222 = arith.subf %217, %221 : vector<8x128xf32>
    %223 = vector.broadcast %5 : f32 to vector<8x128xf32>
    %224 = arith.addf %223, %213 : vector<8x128xf32>
    %225 = vector.broadcast %1 : f32 to vector<8x128xf32>
    %226 = arith.addf %225, %7 : vector<8x128xf32>
    %227 = math.log %226 : vector<8x128xf32>
    %228 = arith.mulf %10, %227 : vector<8x128xf32>
    %229 = arith.subf %224, %228 : vector<8x128xf32>
    %230 = arith.maximumf %222, %229 : vector<8x128xf32>
    %231 = arith.subf %222, %229 : vector<8x128xf32>
    %232 = math.absf %231 : vector<8x128xf32>
    %cst_70 = arith.constant 0.000000e+00 : f32
    %233 = vector.broadcast %cst_70 : f32 to vector<8x128xf32>
    %234 = arith.subf %233, %232 : vector<8x128xf32>
    %235 = math.exp %234 : vector<8x128xf32>
    %cst_71 = arith.constant 5.000000e-01 : f32
    %236 = vector.broadcast %cst_71 : f32 to vector<8x128xf32>
    %237 = arith.subf %235, %236 : vector<8x128xf32>
    %cst_72 = arith.constant 0.666666686 : f32
    %238 = vector.broadcast %cst_72 : f32 to vector<8x128xf32>
    %239 = arith.mulf %237, %238 : vector<8x128xf32>
    %cst_73 = arith.constant 0.000000e+00 : f32
    %240 = vector.broadcast %cst_73 : f32 to vector<8x128xf32>
    %241 = arith.mulf %240, %239 : vector<8x128xf32>
    %cst_74 = arith.constant 0.111111112 : f32
    %242 = vector.broadcast %cst_74 : f32 to vector<8x128xf32>
    %243 = arith.addf %241, %242 : vector<8x128xf32>
    %244 = arith.mulf %243, %239 : vector<8x128xf32>
    %cst_75 = arith.constant -1.250000e-01 : f32
    %245 = vector.broadcast %cst_75 : f32 to vector<8x128xf32>
    %246 = arith.addf %244, %245 : vector<8x128xf32>
    %247 = arith.mulf %246, %239 : vector<8x128xf32>
    %cst_76 = arith.constant 0.142857149 : f32
    %248 = vector.broadcast %cst_76 : f32 to vector<8x128xf32>
    %249 = arith.addf %247, %248 : vector<8x128xf32>
    %250 = arith.mulf %249, %239 : vector<8x128xf32>
    %cst_77 = arith.constant -0.166666672 : f32
    %251 = vector.broadcast %cst_77 : f32 to vector<8x128xf32>
    %252 = arith.addf %250, %251 : vector<8x128xf32>
    %253 = arith.mulf %252, %239 : vector<8x128xf32>
    %cst_78 = arith.constant 2.000000e-01 : f32
    %254 = vector.broadcast %cst_78 : f32 to vector<8x128xf32>
    %255 = arith.addf %253, %254 : vector<8x128xf32>
    %256 = arith.mulf %255, %239 : vector<8x128xf32>
    %cst_79 = arith.constant -2.500000e-01 : f32
    %257 = vector.broadcast %cst_79 : f32 to vector<8x128xf32>
    %258 = arith.addf %256, %257 : vector<8x128xf32>
    %259 = arith.mulf %258, %239 : vector<8x128xf32>
    %cst_80 = arith.constant 0.333333343 : f32
    %260 = vector.broadcast %cst_80 : f32 to vector<8x128xf32>
    %261 = arith.addf %259, %260 : vector<8x128xf32>
    %262 = arith.mulf %261, %239 : vector<8x128xf32>
    %cst_81 = arith.constant -5.000000e-01 : f32
    %263 = vector.broadcast %cst_81 : f32 to vector<8x128xf32>
    %264 = arith.addf %262, %263 : vector<8x128xf32>
    %265 = arith.mulf %264, %239 : vector<8x128xf32>
    %cst_82 = arith.constant 1.000000e+00 : f32
    %266 = vector.broadcast %cst_82 : f32 to vector<8x128xf32>
    %267 = arith.addf %265, %266 : vector<8x128xf32>
    %268 = arith.mulf %267, %239 : vector<8x128xf32>
    %cst_83 = arith.constant 0.405465096 : f32
    %269 = vector.broadcast %cst_83 : f32 to vector<8x128xf32>
    %270 = arith.addf %269, %268 : vector<8x128xf32>
    %271 = arith.addf %230, %270 : vector<8x128xf32>
    %c0_84 = arith.constant 0 : index
    %c0_85 = arith.constant 0 : index
    %272 = vector.load %arg5[%c0_84, %c0_85] : memref<8x128xf32, #tpu.memory_space<vmem>>, vector<8x128xf32>
    tpu.vector_store %arg5[%c0_84, %c0_85], %271 {strides = array<i32>} : memref<8x128xf32, #tpu.memory_space<vmem>>, vector<8x128xf32>,
    return
  }
  func.func @transform_0(%arg0: i32) -> i32 {
    %c0_i32 = arith.constant 0 : i32
    %c0_i32_0 = arith.constant 0 : i32
    return %c0_i32 : i32
  }
  func.func @transform_1(%arg0: i32) -> (i32, i32) {
    %c0_i32 = arith.constant 0 : i32
    %c0_i32_0 = arith.constant 0 : i32
    return %arg0, %c0_i32 : i32, i32
  }
  func.func @transform_2(%arg0: i32) -> (i32, i32) {
    %c0_i32 = arith.constant 0 : i32
    %c0_i32_0 = arith.constant 0 : i32
    return %arg0, %c0_i32 : i32, i32
  }
  func.func @transform_3(%arg0: i32) -> (i32, i32) {
    %c0_i32 = arith.constant 0 : i32
    %c0_i32_0 = arith.constant 0 : i32
    return %arg0, %c0_i32 : i32, i32
  }
  func.func @transform_4(%arg0: i32) -> (i32, i32) {
    %c0_i32 = arith.constant 0 : i32
    %c0_i32_0 = arith.constant 0 : i32
    return %arg0, %c0_i32 : i32, i32
  }
}

</mosaic_0001>

<bundles_post_ra>
// kernel: mbg_nbd_forward.1
= control target key start
LH: loop header
LB: loop body
LE: loop exit
PB: predicated region body
PF: predicated region fallthrough
CT: control target
= control target key end

     0   :  { %9 = vsyncpa [#allocation4], 0  ;;  %s930_s0 = inlined_call_operand.vmem [shape: f32[8], index: 0, kind: input, shape index: {}]   ;;  %s931_s1 = inlined_call_operand.vmem [shape: f32[16,128], index: 1, kind: input, shape index: {}]   ;;  %s932_s2 = inlined_call_operand.vmem [shape: f32[16,128], index: 2, kind: input, shape index: {}]   ;;  %s933_s3 = inlined_call_operand.vmem [shape: f32[16,128], index: 3, kind: input, shape index: {}]   ;;  %s934_s4 = inlined_call_operand.hbm [shape: f32[16,128], index: 4, kind: output, shape index: {}]  }
   0x1   :  { %10 = vsyncpa [#allocation3], 0 }
   0x2   :  { %12 = vsyncpa [#allocation3 + $0x1], 0  ;;  %s750_s15 = smov 0   ;;  %s752_s16 = smov 0  }
   0x3   :  { %s754_s17 = smov 0   ;;  %s756_s18 = smov 0  }
   0x4 LB: > { %s771_s19 = sadd.s32 4294967295, %s722_s18   ;;  %s547_s20 = sadd.s32 4294967294, %s722_s18   ;;  %s722_s18 = sphi %s756_s18, %s940_s18   ;;  %s718_s17 = sphi %s754_s17, %s939_s17   ;;  %s714_s16 = sphi %s752_s16, %s938_s16   ;;  %s710_s15 = sphi %s750_s15, %s937_s15  }
   0x5   : > { %s775_s21 = sadd.s32 1, %s722_s18   ;;  %s124_s22 = sadd.s32 1, %s718_s17 }
   0x6   : > { %s121_s23 = ssub.s32 %s722_s18, %s775_s21  ;;  %p134_p0 = scmp.ne.s32.totalorder %s718_s17, %s714_s16 }
   0x7   : > { %p122_p1 = scmp.eq.s32.totalorder %s121_s23, 0  ;;  %p135_p2 = scmp.eq.s32.totalorder %s771_s19, 1 }
   0x8   : > { %p140_p3 = scmp.ne.s32.totalorder %s714_s16, %s710_s15  ;;  %p141_p4 = scmp.eq.s32.totalorder %s547_s20, 1 }
   0x9   : > { %s786_s24 = scalar_select %p122_p1, %s718_s17, %s124_s22  }
   0xa   : > { %p788_p5 = por %p135_p2, %p134_p0  ;;  %p792_p6 = por %p141_p4, %p140_p3 }
   0xb   : > { %p548_p7 = scmp.ge.s32.totalorder %s722_s18, 1  ;;  %p148_p8 = scmp.lt.s32.totalorder %s722_s18, 3 }
   0xc   : > { %p583_p9 = scmp.eq.s32.totalorder %s771_s19, 0  ;;  %s160_s29 = sshll.u32 %s930_s0, 4  ;;  %s161_s29 = int_to_ptr.vmem [resolvable:$true] %s160_s29 }
   0xd   : > { %p149_p10 = pnand %p548_p7, %p148_p8  ;;  %s724_s30 = smov [#allocation2]  }
   0xf   : > { %p575_p11 = pneg %p149_p10  ;;  %194 = sbr.rel (%p149_p10) target bundleno = 167 (0xa7), region = 36 }
  0x11   : > { %p576_p12 = pnand %p583_p9, %p575_p11 }
  0x13   : > { %578 = dma.vmem_to_smem (!%p576_p12), %s161_s29, 16, %s724_s30, [#allocation4]  }
  0x14   : > { %701 = dma.done.wait (%p583_p9), [#allocation4], 16  }
  0x15   : > { %703 = vsyncadd (%p583_p9), [#allocation4], 4294967280 }
  0x16   : > { %201 = sfence }
  0x17   : > { %p229_p13 = scmp.lt.s32.totalorder %s771_s19, 1  ;;  %s241_s5 = sld [smem:[#allocation2]] }
  0x18   : > { %s558_s7 = sld [smem:[#allocation2 + $0x2]]  ;;  %s676_s27 = scalar_lea.hbm %s934_s4, 16 }
  0x19   : > { %s230_s6 = scalar_select %p229_p13, %s771_s19, 1 }
  0x1a   : > { %s559_s9 = sld [smem:[#allocation2 + $0x3]] }
  0x1b   : > { %s804_s8 = sshll.u32 %s230_s6, 3  ;;  %s876_s13 = sld [smem:[#allocation2 + $0x1]] }
  0x1c   : > { %s232_s12 = scalar_lea.vmem %s931_s1, %s804_s8  ;;  %s236_s22 = scalar_lea.vmem %s932_s2, %s804_s8 }
  0x1d   : > { %v247_v0 = vld [vmem:[%s232_s12] sm:$0xff]  ;;  %v250_v1 = vstv %s241_s5  ;;  %s240_s28 = scalar_lea.vmem %s933_s3, %s804_s8  ;;  %s560_s29 = sld [smem:[#allocation2 + $0x4]] }
  0x1e   : > { %v810_v2 = vadd.f32 %v250_v1, %v247_v0  ;;  %v252_v3 = vstv %s558_s7  ;;  %s561_s30 = sld [smem:[#allocation2 + $0x5]]  ;;  %s226_s5 = sand.u32 1, %s714_s16  }
  0x1f   : > { %v815_v5 = vadd.f32 %v252_v3, %v247_v0  ;;  %s553_s6 = sshll.u32 %s226_s5, 3  ;;  %s566_s7 = sshll.u32 %s771_s19, 3 }
  0x20   : > { %v813_v4 = vadd.f32 -1.0, %v810_v2  ;;  %v254_v6 = vstv %s559_s9  ;;  %s447_s10 = scalar_lea.hbm %s934_s4, %s566_s7  ;;  %s228_s11 = scalar_lea.vmem [#allocation5], %s553_s6 }
  0x21   : > { %v817_v7 = vadd.f32 %v254_v6, %v247_v0  ;;  %v822_v10 = vadd.f32 -1.0, %v815_v5  ;;  %s449_s12 = sshll.u32 %s228_s11, 4  ;;  %s437_s14 = scalar_lea.sflag [#allocation3], %s226_s5  ;;  %s450_s12 = int_to_ptr.vmem [resolvable:$true] %s449_s12 }
  0x22   : > { %v258_v8 = vadd.f32 60.458332, %v813_v4  ;;  %v273_v9 = vadd.f32 36.0, %v813_v4 }
  0x23   : > { %v318_v13 = vadd.f32 60.458332, %v817_v7  ;;  %v333_v14 = vadd.f32 36.0, %v817_v7  ;;  %v288_v15 = vadd.f32 60.458332, %v822_v10  ;;  %v303_v16 = vadd.f32 36.0, %v822_v10 }
  0x24   : > { %v259_v11 = vmul.f32 %v813_v4, %v258_v8  ;;  %v274_v12 = vmul.f32 %v813_v4, %v273_v9 }
  0x25   : > { %v319_v19 = vmul.f32 %v318_v13, %v817_v7  ;;  %v334_v20 = vmul.f32 %v333_v14, %v817_v7  ;;  %v289_v21 = vmul.f32 %v822_v10, %v288_v15  ;;  %v304_v22 = vmul.f32 %v822_v10, %v303_v16 }
  0x26   : > { %v260_v17 = vadd.f32 1599.0425, %v259_v11  ;;  %v275_v18 = vadd.f32 546.0, %v274_v12  ;;  %v860_v14 = vadd.f32 7.5, %v813_v4 }
  0x27   : > { %v320_v25 = vadd.f32 1599.0425, %v319_v19  ;;  %v335_v26 = vadd.f32 546.0, %v334_v20  ;;  %v290_v27 = vadd.f32 1599.0425, %v289_v21  ;;  %v305_v28 = vadd.f32 546.0, %v304_v22 }
  0x28   : > { %v261_v23 = vmul.f32 %v813_v4, %v260_v17  ;;  %v276_v24 = vmul.f32 %v813_v4, %v275_v18  ;;  %619 = vlog2.f32 %v860_v14 }
  0x29   : > { %v321_v31 = vmul.f32 %v320_v25, %v817_v7  ;;  %v336_v32 = vmul.f32 %v335_v26, %v817_v7  ;;  %v291_v33 = vmul.f32 %v822_v10, %v290_v27  ;;  %v306_v34 = vmul.f32 %v822_v10, %v305_v28 }
  0x2a   : > { %v262_v29 = vadd.f32 24165.51, %v261_v23  ;;  %v277_v30 = vadd.f32 4536.0, %v276_v24  ;;  %v866_v24 = vadd.f32 7.5, %v822_v10 }
  0x2b   : > { %v322_v37 = vadd.f32 24165.51, %v321_v31  ;;  %v337_v38 = vadd.f32 4536.0, %v336_v32  ;;  %v292_v39 = vadd.f32 24165.51, %v291_v33  ;;  %v307_v40 = vadd.f32 4536.0, %v306_v34 }
  0x2c   : > { %v263_v35 = vmul.f32 %v813_v4, %v262_v29  ;;  %v278_v36 = vmul.f32 %v813_v4, %v277_v30  ;;  %v369_v34 = vadd.f32 7.5, %v817_v7 }
  0x2d   : > { %v323_v43 = vmul.f32 %v322_v37, %v817_v7  ;;  %v338_v44 = vmul.f32 %v337_v38, %v817_v7  ;;  %v293_v45 = vmul.f32 %v822_v10, %v292_v39  ;;  %v308_v46 = vmul.f32 %v822_v10, %v307_v40 }
  0x2e   : > { %v264_v41 = vadd.f32 228235.22, %v263_v35  ;;  %v279_v42 = vadd.f32 22449.0, %v278_v36  ;;  %v620_v35 = vpop.eup %619  ;;  %v370_v40 = vadd.f32 0.5, %v813_v4 }
  0x2f   : > { %v324_v49 = vadd.f32 228235.22, %v323_v43  ;;  %v339_v50 = vadd.f32 22449.0, %v338_v44  ;;  %v294_v51 = vadd.f32 228235.22, %v293_v45 }
  0x30   : > { %v265_v47 = vmul.f32 %v813_v4, %v264_v41  ;;  %v280_v48 = vmul.f32 %v813_v4, %v279_v42  ;;  %v309_v52 = vadd.f32 22449.0, %v308_v46  ;;  %v372_v41 = vmul.f32 0.6931472, %v620_v35 }
  0x31   : > { %v325_v55 = vmul.f32 %v324_v49, %v817_v7  ;;  %v340_v56 = vmul.f32 %v339_v50, %v817_v7  ;;  %v295_v57 = vmul.f32 %v822_v10, %v294_v51 }
  0x32   : > { %v266_v53 = vadd.f32 1379496.3, %v265_v47  ;;  %v281_v54 = vadd.f32 67284.0, %v280_v48  ;;  %v310_v58 = vmul.f32 %v822_v10, %v309_v52  ;;  %v373_v51 = vmul.f32 %v372_v41, %v370_v40 }
  0x33   : > { %v326_v60 = vadd.f32 1379496.3, %v325_v55  ;;  %v341_v61 = vadd.f32 67284.0, %v340_v56  ;;  %v296_v62 = vadd.f32 1379496.3, %v295_v57  ;;  %v393_v57 = vstv %s876_s13 }
  0x34   : > { %v282_v59 = vmul.f32 %v813_v4, %v281_v54  ;;  %v311_v63 = vadd.f32 67284.0, %v310_v58  ;;  %v267_v0 = vmul.f32 %v813_v4, %v266_v53  ;;  %v375_v52 = vadd.f32 0.5, %v822_v10  ;;  %v248_v53 = vld [vmem:[%s236_s22] sm:$0xff]  ;;  %s451_s13 = sshll.u32 %s447_s10, 4  ;;  %s452_s13 = int_to_ptr.hbm [resolvable:$true] %s451_s13 }
  0x35   : > { %v327_v3 = vmul.f32 %v326_v60, %v817_v7  ;;  %v297_v9 = vmul.f32 %v822_v10, %v296_v62  ;;  %v342_v12 = vmul.f32 %v341_v61, %v817_v7  ;;  %v249_v62 = vld [vmem:[%s240_s28] sm:$0xff]  ;;  %s670_s20 = sshra.s32 %s452_s13, 4  ;;  %s671_s20 = int_to_ptr.hbm [resolvable:$true] %s670_s20 }
  0x36   : > { %v283_v1 = vadd.f32 118124.0, %v282_v59  ;;  %v312_v6 = vmul.f32 %v822_v10, %v311_v63  ;;  %v268_v15 = vadd.f32 5210869.0, %v267_v0  ;;  %s672_s19 = scalar_lea.hbm %s671_s20, 8  ;;  %p677_p3 = scmp.lt.s32.totalorder %s671_s20, %s934_s4 }
  0x37   : > { %v328_v11 = vadd.f32 5210869.0, %v327_v3  ;;  %v298_v20 = vadd.f32 5210869.0, %v297_v9  ;;  %v343_v22 = vadd.f32 118124.0, %v342_v12  ;;  %v401_v3 = vadd.f32 %v393_v57, %v248_v53  ;;  %p673_p0 = scmp.ne.s32.totalorder %s671_s20, %s672_s19  ;;  %p678_p4 = scmp.lt.s32.totalorder %s676_s27, %s672_s19 }
  0x38   : > { %v284_v8 = vmul.f32 %v813_v4, %v283_v1  ;;  %v313_v13 = vadd.f32 118124.0, %v312_v6  ;;  %v269_v25 = vmul.f32 %v813_v4, %v268_v15  ;;  %v374_v6 = vsub.f32 %v373_v51, %v860_v14 }
  0x39   : > { %v329_v17 = vmul.f32 %v328_v11, %v817_v7  ;;  %v299_v29 = vmul.f32 %v822_v10, %v298_v20  ;;  %v344_v31 = vmul.f32 %v343_v22, %v817_v7  ;;  %v381_v9 = vadd.f32 0.5, %v817_v7  ;;  %p674_p1 = pnand %p673_p0, %p788_p5  ;;  %p679_p7 = por %p678_p4, %p677_p3 }
  0x3a   : > { %v285_v16 = vadd.f32 109584.0, %v284_v8  ;;  %v314_v18 = vmul.f32 %v822_v10, %v313_v13  ;;  %v270_v33 = vadd.f32 11246929.0, %v269_v25  ;;  %v394_v13 = vadd.f32 %v393_v57, %v249_v62 }
  0x3b   : > { %v330_v21 = vadd.f32 11246929.0, %v329_v17  ;;  %v300_v36 = vadd.f32 11246929.0, %v299_v29  ;;  %v345_v37 = vadd.f32 109584.0, %v344_v31  ;;  %v399_v29 = vstv %s561_s30  ;;  %p675_p2 = pneg %p674_p1 }
  0x3c   : > { %v286_v19 = vmul.f32 %v813_v4, %v285_v16  ;;  %v315_v23 = vadd.f32 109584.0, %v314_v18  ;;  %v271_v39 = vmul.f32 %v813_v4, %v270_v33 }
  0x3d   : > { %v331_v27 = vmul.f32 %v330_v21, %v817_v7  ;;  %v301_v45 = vmul.f32 %v822_v10, %v300_v36  ;;  %v346_v46 = vmul.f32 %v345_v37, %v817_v7  ;;  %p680_p8 = pnand %p679_p7, %p675_p2 }
  0x3e   : > { %v287_v26 = vadd.f32 40320.0, %v286_v19  ;;  %v316_v28 = vmul.f32 %v822_v10, %v315_v23  ;;  %v272_v4 = vadd.f32 10619610.0, %v271_v39 }
  0x3f   : > { %v332_v30 = vadd.f32 10619610.0, %v331_v27  ;;  %v302_v59 = vadd.f32 10619610.0, %v301_v45  ;;  %v347_v60 = vadd.f32 40320.0, %v346_v46 }
  0x40   : > { %621 = vrcp.f32 %v287_v26  ;;  %v317_v32 = vadd.f32 40320.0, %v316_v28  ;;  %v388_v28 = vstv %s560_s29 }
  0x41   : > { %623 = vlog2.f32 %v866_v24 }
  0x42   : > { %625 = vrcp.f32 %v332_v30 }
  0x43   : > { %627 = vrcp.f32 %v317_v32 }
  0x44   : > { %629 = vlog2.f32 %v369_v34 }
  0x45   : > { %631 = vlog2.f32 %v401_v3 }
  0x46   : > { %v622_v38 = vpop.eup %621  ;;  %633 = vlog2.f32 %v394_v13 }
  0x47   : > { %v624_v42 = vpop.eup %623  ;;  %v349_v43 = vmul.f32 %v622_v38, %v287_v26  ;;  %635 = vlog2.f32 %v815_v5 }
  0x48   : > { %v626_v44 = vpop.eup %625  ;;  %v377_v56 = vmul.f32 0.6931472, %v624_v42 }
  0x49   : > { %v628_v47 = vpop.eup %627  ;;  %v350_v48 = vsub.f32 2.0, %v349_v43  ;;  %v359_v49 = vmul.f32 %v626_v44, %v332_v30 }
  0x4a   : > { %v354_v50 = vmul.f32 %v628_v47, %v317_v32  ;;  %v630_v58 = vpop.eup %629  ;;  %v378_v8 = vmul.f32 %v377_v56, %v375_v52 }
  0x4b   : > { %v351_v54 = vmul.f32 %v622_v38, %v350_v48  ;;  %v360_v55 = vsub.f32 2.0, %v359_v49  ;;  %v383_v10 = vmul.f32 0.6931472, %v630_v58  ;;  %v632_v20 = vpop.eup %631 }
  0x4c   : > { %v355_v61 = vsub.f32 2.0, %v354_v50  ;;  %v379_v16 = vadd.f32 %v378_v8, %v374_v6  ;;  %v634_v7 = vpop.eup %633  ;;  %v403_v23 = vmul.f32 0.6931472, %v632_v20 }
  0x4d   : > { %v361_v63 = vmul.f32 %v626_v44, %v360_v55  ;;  %v352_v0 = vmul.f32 %v351_v54, %v272_v4  ;;  %v384_v17 = vmul.f32 %v383_v10, %v381_v9  ;;  %v636_v21 = vpop.eup %635  ;;  %v396_v27 = vmul.f32 0.6931472, %v634_v7 }
  0x4e   : > { %v356_v1 = vmul.f32 %v628_v47, %v355_v61  ;;  %v380_v14 = vsub.f32 %v379_v16, %v866_v24  ;;  %v391_v31 = vmul.f32 0.6931472, %v636_v21  ;;  %v404_v32 = vmul.f32 %v403_v23, %v810_v2 }
  0x4f   : > { %v362_v12 = vmul.f32 %v361_v63, %v347_v60  ;;  %v385_v19 = vsub.f32 %v384_v17, %v369_v34  ;;  %v397_v33 = vmul.f32 %v396_v27, %v810_v2 }
  0x50   : > { %v357_v11 = vmul.f32 %v356_v1, %v302_v59 }
  0x51   : > { %v386_v22 = vsub.f32 %v380_v14, %v385_v19 }
  0x52   : > { %v363_v15 = vmul.f32 %v357_v11, %v352_v0 }
  0x54   : > { %v364_v18 = vmul.f32 %v363_v15, %v362_v12 }
  0x56   : > { %637 = vlog2.f32 %v364_v18 }
  0x5c   : > { %v638_v25 = vpop.eup %637 }
  0x5d   : > { %v366_v26 = vmul.f32 0.6931472, %v638_v25 }
  0x5f   : > { %v387_v30 = vadd.f32 %v386_v22, %v366_v26 }
  0x61   : > { %v389_v5 = vadd.f32 %v388_v28, %v387_v30  ;;  %v400_v35 = vadd.f32 %v399_v29, %v387_v30 }
  0x63   : > { %v392_v24 = vadd.f32 %v391_v31, %v389_v5  ;;  %v405_v34 = vsub.f32 %v400_v35, %v404_v32 }
  0x65   : > { %v398_v36 = vsub.f32 %v392_v24, %v397_v33 }
  0x67   : > { %v407_v37 = vsub.f32 %v398_v36, %v405_v34  ;;  %v406_v60 = vmax.f32 %v398_v36, %v405_v34 }
  0x69   : > { %v408_v38 = vand.u32 2147483647, %v407_v37 }
  0x6b   : > { %v409_v39 = vsub.f32 0.0, %v408_v38 }
  0x6d   : > { %v410_v40 = vmul.f32 1.442695, %v409_v39 }
  0x6f   : > { %639 = vpow2.f32 %v410_v40 }
  0x75   : > { %v640_v41 = vpop.eup %639 }
  0x76   : > { %v564_v42 = vadd.f32 -0.5, %v640_v41 }
  0x78   : > { %v413_v43 = vmul.f32 0.6666667, %v564_v42 }
  0x7a   : > { %v414_v44 = vmul.f32 0.0, %v413_v43 }
  0x7c   : > { %v415_v45 = vadd.f32 0.11111111, %v414_v44 }
  0x7e   : > { %v416_v46 = vmul.f32 %v415_v45, %v413_v43 }
  0x80   : > { %v417_v47 = vadd.f32 -0.125, %v416_v46 }
  0x82   : > { %v418_v48 = vmul.f32 %v417_v47, %v413_v43 }
  0x84   : > { %v419_v2 = vadd.f32 0.14285715, %v418_v48 }
  0x86   : > { %v420_v49 = vmul.f32 %v419_v2, %v413_v43 }
  0x88   : > { %v421_v4 = vadd.f32 -0.16666667, %v420_v49 }
  0x8a   : > { %v422_v50 = vmul.f32 %v421_v4, %v413_v43 }
  0x8c   : > { %v423_v51 = vadd.f32 0.2, %v422_v50 }
  0x8e   : > { %v424_v52 = vmul.f32 %v423_v51, %v413_v43 }
  0x90   : > { %v425_v53 = vadd.f32 -0.25, %v424_v52 }
  0x92   : > { %v426_v54 = vmul.f32 %v425_v53, %v413_v43 }
  0x94   : > { %v427_v55 = vadd.f32 0.33333334, %v426_v54 }
  0x96   : > { %v428_v56 = vmul.f32 %v427_v55, %v413_v43 }
  0x98   : > { %v429_v57 = vadd.f32 -0.5, %v428_v56 }
  0x9a   : > { %v430_v58 = vmul.f32 %v429_v57, %v413_v43 }
  0x9c   : > { %v431_v59 = vadd.f32 1.0, %v430_v58 }
  0x9e   : > { %v432_v61 = vmul.f32 %v431_v59, %v413_v43 }
  0xa0   : > { %v433_v62 = vadd.f32 0.4054651, %v432_v61 }
  0xa2   : > { %v434_v63 = vadd.f32 %v433_v62, %v406_v60 }
  0xa4   : > { %435 = vst [vmem:[%s228_s11] sm:$0xff] %v434_v63 }
  0xa5   : > { %683 = shalt.err (!%p680_p8)
}
  0xa6   : > { %573 = dma.vmem_to_hbm [thread:$0]  (%p788_p5), %s450_s12, 128, %s452_s13, %s437_s14  }
  0xa7 PF: > { %p585_p9 = scmp.ge.s32.totalorder %s722_s18, 2  ;;  %s463_s30 = sand.u32 1, %s710_s15  }
  0xa8   : > { %s464_s5 = scalar_lea.sflag [#allocation3], %s463_s30 }
  0xa9   : > { %p580_p10 = pnand %p585_p9, %p792_p6 }
  0xab   : > { %p581_p11 = pneg %p580_p10 }
  0xad   : > { %705 = dma.done.wait (%p581_p11), %s464_s5, 128  }
  0xae   : > { %707 = vsyncadd (%p581_p11), %s464_s5, 4294967168  ;;  %p15_p12 = scmp.ge.s32.totalorder %s775_s21, 4   ;;  %s937_s15 = smov %s714_s16 }
  0xaf   : > { %s938_s16 = smov %s718_s17  ;;  %s939_s17 = smov %s786_s24 }
  0xb0   : > { %s940_s18 = smov %s775_s21  ;;  %17 = sbr.rel (!%p15_p12) target bundleno = 4 (0x4), region = 82 }
  0xb5   :  { %470 = vsyncpa [#allocation3], 1 }
  0xb6   :  { %472 = vsyncpa [#allocation3 + $0x1], 1 }
  0xb7   :  { %473 = vsyncpa [#allocation4], 1 }
  0xb8   :  { %475 = vsyncpa [#allocation4 + $0x1], 1 }

</bundles_post_ra>
